<compile_context>
chip_gen: v7x
topology: tpu7x:2x2x1
jax: 0.10.0
libtpu: 0.0.40
codegen_flags: <defaults>
</compile_context>

<pallas_src>
import jax
import jax.numpy as jnp
from jax.experimental import pallas as pl
from jax.experimental.pallas import tpu as pltpu

_LANE = 128


def _sse_combine_kernel(gate_ref, cw_ref, cb_ref, x_ref, o_ref):
    """One (batch, spatial-tile) step.

    gate_ref : (1, C, 1)       precomputed channel gate, already holds (g + 1), f32
    cw_ref   : (1, C)          1x1x1 conv weight row (C -> 1), f32
    cb_ref   : (1, 1)          conv bias, f32
    x_ref    : (1, C, TILE_S)  input tile (input dtype)
    o_ref    : (1, C, TILE_S)  output tile (input dtype)
    """
    x = x_ref[0]                                                     # (C, Ts)

    # ---- spatial SE: 1x1x1 conv (C -> 1) on the MXU, exact sigmoid ----
    s_pre = jnp.dot(cw_ref[...].astype(x.dtype), x,
                    preferred_element_type=jnp.float32)              # (1, Ts) f32
    s_pre = s_pre + cb_ref[...]
    s_gate = jax.nn.sigmoid(s_pre)                                   # (1, Ts) f32

    # ---- fused combine: cSE(x) + sSE(x) + x = x * (g + 1 + s_gate) ----
    # Elementwise math stays in the input dtype (only the small (C,1)/(1,Ts)
    # rows are cast), keeping vreg pressure / VMEM temps minimal for bf16.
    cdt = x.dtype
    scale = gate_ref[0].astype(cdt) + s_gate.astype(cdt)             # (C, Ts)
    out = jnp.maximum(x * scale, 0.0)                                # relu
    o_ref[0] = out.astype(o_ref.dtype)


@jax.jit
def channel_spatial_se_3d(x, w1, b1, w2, b2, conv_w, conv_b):
    """x: (B, C, D, H, W).  Returns same shape. out_channels == num_channels."""
    B, C, D, H, W = x.shape
    S = D * H * W
    x_flat = x.reshape(B, C, S)

    # ---- channel-SE pre-pass (tiny, batched over B; plain XLA) ----
    z = jnp.mean(x_flat, axis=-1, dtype=jnp.float32)                 # (B, C)
    h = jax.nn.relu(z @ w1.T.astype(jnp.float32) + b1.astype(jnp.float32))
    g = jax.nn.sigmoid(h @ w2.T.astype(jnp.float32) + b2.astype(jnp.float32))
    gate = (g + 1.0)[:, :, None]                                     # (B, C, 1), "+1" folded in

    # ---- tile selection: lane-dense, dtype-aware VMEM budget, no padding ----
    itemsize = jnp.dtype(x.dtype).itemsize
    # Working set per spatial column: double-buffered in+out tiles in x dtype
    # plus ~2 full-tile f32 elementwise temps inside the kernel.
    per_col_bytes = C * (4 * itemsize + 2 * 4)
    budget_bytes = 40 * 1024 * 1024                                  # leaves headroom under the 48 MiB limit
    cap_s = max(_LANE, ((budget_bytes // per_col_bytes) // _LANE) * _LANE)
    if S <= cap_s:
        tile_s = S                      # full-S block; legal even if S % 128 != 0
        n_s = 1
    else:
        tile_s = cap_s                  # multiple of 128 (lane-dense)
        n_s = pl.cdiv(S, tile_s)        # trailing partial block masked by Pallas

    cw = conv_w.reshape(1, C).astype(jnp.float32)
    cb = conv_b.reshape(1, 1).astype(jnp.float32)

    out = pl.pallas_call(
        _sse_combine_kernel,
        out_shape=jax.ShapeDtypeStruct((B, C, S), x.dtype),
        grid_spec=pltpu.PrefetchScalarGridSpec(
            num_scalar_prefetch=0,
            grid=(B, n_s),
            in_specs=[
                pl.BlockSpec((1, C, 1), lambda b, s: (b, 0, 0)),       # channel gate
                pl.BlockSpec((1, C), lambda b, s: (0, 0)),             # conv weight
                pl.BlockSpec((1, 1), lambda b, s: (0, 0)),             # conv bias
                pl.BlockSpec((1, C, tile_s), lambda b, s: (b, 0, s)),  # x tile
            ],
            out_specs=pl.BlockSpec((1, C, tile_s), lambda b, s: (b, 0, s)),
        ),
        compiler_params=pltpu.CompilerParams(
            dimension_semantics=("parallel", "parallel"),
            # 48 MiB: > default scoped limit on every generation, < 64 MiB
            # physical VMEM on v7x (and far below v5e/v6e's 128 MiB).
            vmem_limit_bytes=48 * 1024 * 1024,
        ),
    )(gate, cw, cb, x_flat)

    return out.reshape(B, C, D, H, W)


def _reference(x, w1, b1, w2, b2, conv_w, conv_b):
    """Plain-JAX reference matching the PyTorch module semantics."""
    z = jnp.mean(x, axis=(2, 3, 4))                                  # (B, C)
    h = jax.nn.relu(z @ w1.T + b1)                                   # (B, Cr)
    g = jax.nn.sigmoid(h @ w2.T + b2)                                # (B, C)
    cse = x * g[:, :, None, None, None]
    s = jnp.einsum('bcdhw,c->bdhw', x, conv_w) + conv_b
    sse = x * jax.nn.sigmoid(s)[:, None]
    return jax.nn.relu(cse + sse + x)


if __name__ == "__main__":
    B, C, D, H, W = 2, 4, 8, 8, 8
    reduction_ratio = 2
    Cr = C // reduction_ratio
    out_channels = C  # module default: out_channels = num_channels

    key = jax.random.PRNGKey(0)
    kx, k1, k2, k3, k4, k5, k6 = jax.random.split(key, 7)

    x = jax.random.normal(kx, (B, C, D, H, W), dtype=jnp.float32)

    # Deterministic parameter init (uniform, roughly matching nn.Linear / nn.Conv3d scale)
    w1 = jax.random.uniform(k1, (Cr, C), jnp.float32, -1.0, 1.0) / jnp.sqrt(C)
    b1 = jax.random.uniform(k2, (Cr,), jnp.float32, -1.0, 1.0) / jnp.sqrt(C)
    w2 = jax.random.uniform(k3, (out_channels, Cr), jnp.float32, -1.0, 1.0) / jnp.sqrt(Cr)
    b2 = jax.random.uniform(k4, (out_channels,), jnp.float32, -1.0, 1.0) / jnp.sqrt(Cr)
    conv_w = jax.random.uniform(k5, (C,), jnp.float32, -1.0, 1.0) / jnp.sqrt(C)
    conv_b = jax.random.uniform(k6, (1,), jnp.float32, -1.0, 1.0) / jnp.sqrt(C)

    out = channel_spatial_se_3d(x, w1, b1, w2, b2, conv_w, conv_b)
    out = jax.block_until_ready(out)

    ref = _reference(x, w1, b1, w2, b2, conv_w, conv_b)
    assert out.shape == (B, C, D, H, W)
    # Exact sigmoid is used in-kernel; remaining tolerance covers MXU matmul
    # precision on the 1x1x1 conv and the algebraically fused combine.
    assert jnp.allclose(out, ref, atol=2e-3, rtol=2e-3), "mismatch vs reference"

    print("KERNEL_OK")
</pallas_src>

<mosaic_0001>
module attributes {stable_mosaic.version = 11 : i64} {
  func.func @_sse_combine_kernel(%arg0: i32, %arg1: i32, %arg2: memref<1x4x1xf32, #tpu.memory_space<vmem>>, %arg3: memref<1x4xf32, #tpu.memory_space<vmem>>, %arg4: memref<1x1xf32, #tpu.memory_space<vmem>>, %arg5: memref<1x4x512xf32, #tpu.memory_space<vmem>>, %arg6: memref<1x4x512xf32, #tpu.memory_space<vmem>>) attributes {dimension_semantics = [#tpu.dimension_semantics<parallel>, #tpu.dimension_semantics<parallel>], iteration_bounds = array<i64: 2, 1>, scalar_prefetch = 0 : i64, scratch_operands = 0 : i64, tpu.core_type = #tpu.core_type<tc>, window_params = [{transform_indices = @transform_0, window_bounds = array<i64: 1, 4, 1>}, {pipeline_mode = #tpu.pipeline_mode<synchronous>, transform_indices = @transform_1, window_bounds = array<i64: 1, 4>}, {pipeline_mode = #tpu.pipeline_mode<synchronous>, transform_indices = @transform_2, window_bounds = array<i64: 1, 1>}, {transform_indices = @transform_3, window_bounds = array<i64: 1, 4, 512>}, {transform_indices = @transform_4, window_bounds = array<i64: 1, 4, 512>}]} {
    %c0 = arith.constant 0 : index
    %c0_0 = arith.constant 0 : index
    %c0_1 = arith.constant 0 : index
    %0 = vector.load %arg5[%c0, %c0_0, %c0_1] : memref<1x4x512xf32, #tpu.memory_space<vmem>>, vector<1x4x512xf32>
    %1 = vector.shape_cast %0 : vector<1x4x512xf32> to vector<4x512xf32>
    %c0_2 = arith.constant 0 : index
    %c0_3 = arith.constant 0 : index
    %2 = vector.load %arg3[%c0_2, %c0_3] : memref<1x4xf32, #tpu.memory_space<vmem>>, vector<1x4xf32>
    %cst = arith.constant dense<0.000000e+00> : vector<1x512xf32>
    %3 = tpu.matmul %2, %1, %cst {dimension_numbers = #tpu.dot_dimension_numbers<[1], [0], [0], [1], [0, 0, 1, 1], [], []>} : vector<1x4xf32>, vector<4x512xf32>, vector<1x512xf32> -> vector<1x512xf32>
    %c0_4 = arith.constant 0 : index
    %c0_5 = arith.constant 0 : index
    %4 = vector.load %arg4[%c0_4, %c0_5] : memref<1x1xf32, #tpu.memory_space<vmem>>, vector<1x1xf32>
    %5 = vector.broadcast %4 : vector<1x1xf32> to vector<1x512xf32>
    %6 = arith.addf %3, %5 : vector<1x512xf32>
    %7 = arith.negf %6 : vector<1x512xf32>
    %8 = math.exp %7 : vector<1x512xf32>
    %cst_6 = arith.constant 1.000000e+00 : f32
    %9 = vector.broadcast %cst_6 : f32 to vector<1x512xf32>
    %10 = arith.addf %9, %8 : vector<1x512xf32>
    %11 = arith.divf %9, %10 : vector<1x512xf32>
    %c0_7 = arith.constant 0 : index
    %c0_8 = arith.constant 0 : index
    %c0_9 = arith.constant 0 : index
    %12 = vector.load %arg2[%c0_7, %c0_8, %c0_9] : memref<1x4x1xf32, #tpu.memory_space<vmem>>, vector<1x4x1xf32>
    %13 = vector.shape_cast %12 : vector<1x4x1xf32> to vector<4x1xf32>
    %14 = vector.broadcast %13 : vector<4x1xf32> to vector<4x512xf32>
    %15 = vector.broadcast %11 : vector<1x512xf32> to vector<4x512xf32>
    %16 = arith.addf %14, %15 : vector<4x512xf32>
    %17 = arith.mulf %1, %16 : vector<4x512xf32>
    %cst_10 = arith.constant 0.000000e+00 : f32
    %18 = vector.broadcast %cst_10 : f32 to vector<4x512xf32>
    %19 = arith.maximumf %17, %18 : vector<4x512xf32>
    %c0_11 = arith.constant 0 : index
    %c0_12 = arith.constant 0 : index
    %c0_13 = arith.constant 0 : index
    %20 = vector.load %arg6[%c0_11, %c0_12, %c0_13] : memref<1x4x512xf32, #tpu.memory_space<vmem>>, vector<1x4x512xf32>
    %21 = vector.shape_cast %20 : vector<1x4x512xf32> to vector<4x512xf32>
    %22 = vector.shape_cast %19 : vector<4x512xf32> to vector<1x4x512xf32>
    tpu.vector_store %arg6[%c0_11, %c0_12, %c0_13], %22 {strides = array<i32>} : memref<1x4x512xf32, #tpu.memory_space<vmem>>, vector<1x4x512xf32>,
    return
  }
  func.func @transform_0(%arg0: i32, %arg1: i32) -> (i32, i32, i32) {
    %c0_i32 = arith.constant 0 : i32
    %c0_i32_0 = arith.constant 0 : i32
    %c0_i32_1 = arith.constant 0 : i32
    return %arg0, %c0_i32, %c0_i32_0 : i32, i32, i32
  }
  func.func @transform_1(%arg0: i32, %arg1: i32) -> (i32, i32) {
    %c0_i32 = arith.constant 0 : i32
    %c0_i32_0 = arith.constant 0 : i32
    %c0_i32_1 = arith.constant 0 : i32
    return %c0_i32, %c0_i32_0 : i32, i32
  }
  func.func @transform_2(%arg0: i32, %arg1: i32) -> (i32, i32) {
    %c0_i32 = arith.constant 0 : i32
    %c0_i32_0 = arith.constant 0 : i32
    %c0_i32_1 = arith.constant 0 : i32
    return %c0_i32, %c0_i32_0 : i32, i32
  }
  func.func @transform_3(%arg0: i32, %arg1: i32) -> (i32, i32, i32) {
    %c0_i32 = arith.constant 0 : i32
    %c0_i32_0 = arith.constant 0 : i32
    return %arg0, %c0_i32, %arg1 : i32, i32, i32
  }
  func.func @transform_4(%arg0: i32, %arg1: i32) -> (i32, i32, i32) {
    %c0_i32 = arith.constant 0 : i32
    %c0_i32_0 = arith.constant 0 : i32
    return %arg0, %c0_i32, %arg1 : i32, i32, i32
  }
}

</mosaic_0001>

<bundles_post_ra>
// kernel: channel_spatial_se_3d.1
= control target key start
LH: loop header
LB: loop body
LE: loop exit
PB: predicated region body
PF: predicated region fallthrough
CT: control target
= control target key end

     0   :  { %s714_s17 = smov 0   ;;  %s716_s18 = smov 0   ;;  %s773_s0 = inlined_call_operand.vmem [shape: f32[2,4,1], index: 0, kind: input, shape index: {}]   ;;  %s774_s1 = inlined_call_operand.vmem [shape: f32[1,4], index: 1, kind: input, shape index: {}]   ;;  %s775_s2 = inlined_call_operand.<no memory space> [shape: f32[1,1], index: 2, kind: input, shape index: {}]   ;;  %s776_s3 = inlined_call_operand.vmem [shape: f32[2,4,512], index: 3, kind: input, shape index: {}]   ;;  %s777_s4 = inlined_call_operand.vmem [shape: f32[2,4,512], index: 4, kind: output, shape index: {}]  }
   0x1   :  { %v9_v0 = vstv %s775_s2  ;;  %s718_s19 = smov 0  }
   0x2   :  { %10 = vst [vmem:[#allocation2] sm:$0x1] %v9_v0 }
   0x3 LB: > { %s28_s2 = sadd.s32 1, %s678_s18  ;;  %p595_p0 = scmp.ge.s32.totalorder %s682_s19, 1  ;;  %s682_s19 = sphi %s718_s19, %s16_s19   ;;  %s678_s18 = sphi %s716_s18, %s779_s18   ;;  %s674_s17 = sphi %s714_s17, %s778_s17  }
   0x4   : > { %p30_p1 = scmp.ge.s32.totalorder %s28_s2, 2  ;;  %p194_p2 = scmp.lt.s32.totalorder %s682_s19, 3 }
   0x6   : > { %s781_s2 = smov (%p30_p1, %s28_s2), 0  ;;  %p195_p3 = pnand %p595_p0, %p194_p2 }
   0x7   : > { %p232_p4 = scmp.lt.s32.totalorder (!%p195_p3), %s674_s17, 1  ;;  %v684_v1 = vmov (!%p195_p3), 0.0   ;;  %v685_v3 = vmov (!%p195_p3), 0   ;;  %vm277_vm0 = vcmask (!%p195_p3), 1043456   ;;  %v258_v9 = vld [vmem:[%s774_s1] sm:$0x1] (!%p195_p3)  ;;  %v265_v10 = vlaneseq (!%p195_p3) }
   0x8   : > { %198 = sbr.rel (%p195_p3) target bundleno = 277 (0x115), region = 36  ;;  %350 = vmatprep.mubr.f32.mxu0 (!%p195_p3), %v684_v1  ;;  %421 = vmatprep.mubr.f32.mxu1 (!%p195_p3), %v684_v1  ;;  %vm273_vm1 = vcmask (!%p195_p3), 31744  }
   0x9   : > { %v259_v2 = vld [vmem:[#allocation2] sm:$0x1] (!%p195_p3)  ;;  %641 = vset.pattern.permute.xlu0 (!%p195_p3), %v685_v3  ;;  %v266_v11 = vshrl.u32 (!%p195_p3), %v265_v10, 7 }
   0xa   : > { %262 = vperm.xlu0 (!%p195_p3), %641, %v259_v2  }
   0xb   : > { %v267_v12 = vsub.s32 (!%p195_p3), 0, %v266_v11 }
   0xf   : > { %s783_s17 = smov (!%p232_p4, %s674_s17), 1 }
  0x10   : > { %s613_s20 = sshll.u32 %s783_s17, 4  ;;  %s596_s21 = sshll.u32 %s783_s17, 2 }
  0x11   : > { %s244_s24 = scalar_lea.vmem %s776_s3, %s613_s20  ;;  %s235_s27 = scalar_lea.vmem %s773_s0, %s596_s21 }
  0x12   : > { %v741_v4 = vld [vmem:[%s244_s24] sm:$0xff]  ;;  %v743_v5 = vld [vmem:[%s244_s24 + $0x8] sm:$0xff]  ;;  %s254_s6 = scalar_lea.vmem %s777_s4, %s613_s20 }
  0x13   : > { %v271_v6 = vcombine.high %v741_v4, %v741_v4  ;;  %v272_v7 = vcombine.high %v743_v5, %v743_v5  ;;  %v452_v8 = vld [vmem:[%s235_s27] sm:$0xf] }
  0x14   : > { %455 = vperm.xlu0 %641, %v452_v8  }
  0x15   : > { %601 = vmatprep.subr.msk.mxu0 %vm277_vm0, %v271_v6  ;;  %604 = vmatprep.subr.msk.mxu1 %vm277_vm0, %v272_v7 }
  0x16   : > { %602 = vmatpush1.msk.msra.mxu0 %vm277_vm0, %v741_v4  ;;  %605 = vmatpush1.msk.msra.mxu1 %vm277_vm0, %v743_v5 }
  0x17   : > { %603 = vmatmul.mubr.msk.f32.vlgmr.msra.gmra.mrb[0].mxu0 %vm273_vm1, %v258_v9  ;;  %606 = vmatmul.mubr.msk.f32.vlgmr.msra.gmra.mrb[0].mxu1 %vm273_vm1, %v258_v9 }
  0x89   : > { %v263_v13 = vpop.permute.xlu0 %262 }
  0x8a   : > { %v268_v14 = vrot.slane %v263_v13, %v267_v12 }
  0x93   : > { %v456_v39 = vpop.permute.xlu0 %455 }
  0xea   : > { %v352_v15 = vpop.f32.mrb[0].mxu0  ;;  %v423_v16 = vpop.f32.mrb[0].mxu1 }
  0xeb   : > { %v353_v17 = vadd.f32 %v352_v15, %v268_v14  ;;  %v424_v18 = vadd.f32 %v423_v16, %v268_v14  ;;  %v354_v19 = vpop.f32.mrb[1].mxu0  ;;  %v425_v20 = vpop.f32.mrb[1].mxu1 }
  0xec   : > { %v355_v21 = vadd.f32 %v354_v19, %v268_v14  ;;  %v426_v22 = vadd.f32 %v425_v20, %v268_v14 }
  0xed   : > { %v607_v23 = vmul.f32 -1.442695, %v353_v17  ;;  %v609_v24 = vmul.f32 -1.442695, %v424_v18 }
  0xee   : > { %v608_v25 = vmul.f32 -1.442695, %v355_v21  ;;  %v610_v26 = vmul.f32 -1.442695, %v426_v22 }
  0xef   : > { %644 = vpow2.f32 %v607_v23 }
  0xf0   : > { %646 = vpow2.f32 %v609_v24 }
  0xf1   : > { %648 = vpow2.f32 %v608_v25 }
  0xf2   : > { %650 = vpow2.f32 %v610_v26 }
  0xf9   : > { %v645_v27 = vpop.eup %644 }
  0xfa   : > { %v647_v28 = vpop.eup %646  ;;  %v440_v29 = vadd.f32 1.0, %v645_v27 }
  0xfb   : > { %v649_v30 = vpop.eup %648  ;;  %v442_v31 = vadd.f32 1.0, %v647_v28 }
  0xfc   : > { %v651_v32 = vpop.eup %650  ;;  %652 = vrcp.f32 %v440_v29  ;;  %v441_v33 = vadd.f32 1.0, %v649_v30 }
  0xfd   : > { %654 = vrcp.f32 %v442_v31  ;;  %v443_v34 = vadd.f32 1.0, %v651_v32 }
  0xfe   : > { %656 = vrcp.f32 %v441_v33 }
  0xff   : > { %658 = vrcp.f32 %v443_v34 }
 0x106   : > { %v653_v35 = vpop.eup %652 }
 0x107   : > { %v655_v36 = vpop.eup %654  ;;  %v461_v37 = vrot.slane %v653_v35, %v267_v12 }
 0x108   : > { %v657_v38 = vpop.eup %656  ;;  %v469_v40 = vrot.slane %v655_v36, %v267_v12 }
 0x109   : > { %v659_v41 = vpop.eup %658  ;;  %v474_v42 = vadd.f32 %v461_v37, %v456_v39  ;;  %v465_v43 = vrot.slane %v657_v38, %v267_v12 }
 0x10a   : > { %v476_v44 = vadd.f32 %v469_v40, %v456_v39  ;;  %v473_v45 = vrot.slane %v659_v41, %v267_v12 }
 0x10b   : > { %v475_v46 = vadd.f32 %v465_v43, %v456_v39 }
 0x10c   : > { %v477_v47 = vadd.f32 %v473_v45, %v456_v39 }
 0x10d   : > { %v482_v48 = vcombine.low %v474_v42, %v475_v46 }
 0x10e   : > { %v483_v49 = vcombine.low %v476_v44, %v477_v47 }
 0x10f   : > { %v486_v50 = vmul.f32 %v482_v48, %v741_v4 }
 0x110   : > { %v487_v51 = vmul.f32 %v483_v49, %v743_v5 }
 0x111   : > { %v488_v52 = vmax.f32 %v486_v50, 0.0 }
 0x112   : > { %v489_v53 = vmax.f32 %v487_v51, 0.0 }
 0x113   : > { %490 = vst [vmem:[%s254_s6] sm:$0xff] %v488_v52 }
 0x114   : > { %491 = vst [vmem:[%s254_s6 + $0x8] sm:$0xff] %v489_v53 }
 0x115 PF: > { %s16_s19 = sadd.s32 1, %s682_s19   ;;  %s778_s17 = smov %s678_s18 }
 0x116   : > { %p13_p5 = scmp.ge.s32.totalorder %s16_s19, 4   ;;  %s779_s18 = smov %s781_s2 }
 0x118   :  { %15 = sbr.rel (!%p13_p5) target bundleno = 3 (0x3), region = 69 }

</bundles_post_ra>
